<compile_context>
chip_gen: v7x
topology: tpu7x:2x2x1
jax: 0.10.0
libtpu: 0.0.40
codegen_flags: <defaults>
</compile_context>

<pallas_src>
import jax
import jax.numpy as jnp
from jax.experimental import pallas as pl
from jax.experimental.pallas import tpu as pltpu

LANE = 128
SUBLANE = 8


def _round_up(x, m):
    return ((x + m - 1) // m) * m


# -----------------------------------------------------------------------------
# Pallas kernel: fused (stand-in backbone + per-condition segmentation head)
# -----------------------------------------------------------------------------
def _msw_kernel(x_ref, w_in_ref, fused_bias_ref, w_head_ref, b_head_ref, o_ref):
    # x_ref          : (TN, C_in)        tile of input point features (compute dtype)
    # w_in_ref       : (C_in, C_bb)      stand-in backbone weight     (compute dtype)
    # fused_bias_ref : (1, C_bb)         context @ W_ctx + b_in, hoisted (f32)
    # w_head_ref     : (C_bb, n_cls_pad) selected seg head weight, lane-padded (compute dtype)
    # b_head_ref     : (1, n_cls_pad)    selected seg head bias, lane-padded (f32)
    # o_ref          : (TN, n_cls_pad)   lane-dense output tile (f32)
    feat = jnp.dot(x_ref[...], w_in_ref[...], preferred_element_type=jnp.float32)
    feat = jnp.maximum(feat + fused_bias_ref[...], 0.0)            # f32 epilogue (v5e-safe)
    logits = jnp.dot(feat.astype(w_head_ref.dtype), w_head_ref[...],
                     preferred_element_type=jnp.float32) + b_head_ref[...]
    o_ref[...] = logits.astype(o_ref.dtype)


def multi_space_forward(x, fused_bias, w_in, w_head_pad, b_head_pad, *,
                        tile_n=1024,
                        compute_dtype=jnp.float32,
                        vmem_limit_bytes=32 * 1024 * 1024):
    """Fused backbone-stub + seg-head forward.

    x            : [N, C_in]  point features
    fused_bias   : [1, C_bb]  context @ W_ctx + b_in (hoisted, grid-invariant)
    w_in         : [C_in, C_bb]
    w_head_pad   : [C_bb, n_cls_pad]  (n_cls_pad is a multiple of 128, zero-padded)
    b_head_pad   : [1, n_cls_pad]
    returns      : [N, n_cls_pad] f32 logits (caller slices to num_classes)
    """
    n, c_in = x.shape
    c_bb = w_in.shape[1]
    n_cls_pad = w_head_pad.shape[1]
    assert n_cls_pad % LANE == 0

    # Clamp tile size for small inputs, keep it sublane-aligned, pad N to a tile multiple.
    tile_n = max(SUBLANE, _round_up(min(tile_n, n), SUBLANE))
    n_pad = _round_up(n, tile_n)
    if n_pad != n:
        x = jnp.pad(x, ((0, n_pad - n), (0, 0)))

    # Cast matmul operands to the compute dtype; keep epilogue operands in f32.
    x_c = x.astype(compute_dtype)
    w_in_c = w_in.astype(compute_dtype)
    w_head_c = w_head_pad.astype(compute_dtype)
    fused_bias = fused_bias.astype(jnp.float32)
    b_head_pad = b_head_pad.astype(jnp.float32)

    grid = (n_pad // tile_n,)
    const = lambda i: (0, 0)  # broadcast (non-tiled) operands

    itemsize = jnp.dtype(compute_dtype).itemsize
    cost = pl.CostEstimate(
        flops=2 * n_pad * (c_in * c_bb + c_bb * n_cls_pad),
        transcendentals=0,
        bytes_accessed=(n_pad * c_in * itemsize                      # x
                        + n_pad * n_cls_pad * 4                      # output (f32)
                        + (c_in * c_bb + c_bb * n_cls_pad) * itemsize
                        + (c_bb + n_cls_pad) * 4),
    )

    out = pl.pallas_call(
        _msw_kernel,
        out_shape=jax.ShapeDtypeStruct((n_pad, n_cls_pad), jnp.float32),
        grid_spec=pltpu.PrefetchScalarGridSpec(
            num_scalar_prefetch=0,
            grid=grid,
            in_specs=[
                pl.BlockSpec((tile_n, c_in), lambda i: (i, 0)),     # x tiles
                pl.BlockSpec((c_in, c_bb), const),                  # W_in
                pl.BlockSpec((1, c_bb), const),                     # fused bias
                pl.BlockSpec((c_bb, n_cls_pad), const),             # W_head (padded)
                pl.BlockSpec((1, n_cls_pad), const),                # b_head (padded)
            ],
            out_specs=pl.BlockSpec((tile_n, n_cls_pad), lambda i: (i, 0)),
        ),
        compiler_params=pltpu.CompilerParams(
            dimension_semantics=("parallel",),
            vmem_limit_bytes=vmem_limit_bytes,
        ),
        cost_estimate=cost,
    )(x_c, w_in_c, fused_bias, w_head_c, b_head_pad)

    return out[:n]


# -----------------------------------------------------------------------------
# Module wrapper (parameter setup + condition dispatch = glue in plain JAX)
# -----------------------------------------------------------------------------
class MultiSpaceTrainingPallas:
    def __init__(self,
                 in_channels=6,
                 backbone_out_channels=96,
                 context_channels=256,
                 conditions=('Structured3D', 'ScanNet', 'S3DIS'),
                 num_classes=(25, 20, 13),
                 seed=0):
        assert len(conditions) == len(num_classes)
        self.conditions = conditions
        self.num_classes = num_classes

        key = jax.random.PRNGKey(seed)
        ks = jax.random.split(key, 4 + 2 * len(num_classes))

        # nn.Embedding(len(conditions), context_channels)
        self.embedding_table = jax.random.normal(
            ks[0], (len(conditions), context_channels), jnp.float32)

        # deterministic stand-in backbone parameters
        # TODO(synk): replace with the real config-built backbone.
        self.w_in = 0.05 * jax.random.normal(
            ks[1], (in_channels, backbone_out_channels), jnp.float32)
        self.b_in = 0.01 * jax.random.normal(
            ks[2], (1, backbone_out_channels), jnp.float32)
        self.w_ctx = 0.05 * jax.random.normal(
            ks[3], (context_channels, backbone_out_channels), jnp.float32)

        # seg_heads: one nn.Linear(backbone_out_channels, num_cls) per condition.
        # Keep both the exact (unpadded) parameters and lane-dense padded copies
        # (zero-padded to a multiple of 128 output lanes) for the kernel.
        self.seg_heads = []
        self.seg_heads_padded = []
        for i, n_cls in enumerate(num_classes):
            w = 0.05 * jax.random.normal(
                ks[4 + 2 * i], (backbone_out_channels, n_cls), jnp.float32)
            b = 0.01 * jax.random.normal(
                ks[5 + 2 * i], (1, n_cls), jnp.float32)
            self.seg_heads.append((w, b))
            n_cls_pad = _round_up(n_cls, LANE)
            w_pad = jnp.pad(w, ((0, 0), (0, n_cls_pad - n_cls)))
            b_pad = jnp.pad(b, ((0, 0), (0, n_cls_pad - n_cls)))
            self.seg_heads_padded.append((w_pad, b_pad))

    def __call__(self, data_dict, compute_dtype=jnp.float32, tile_n=1024):
        condition = data_dict['condition'][0]
        assert condition in self.conditions
        idx = self.conditions.index(condition)

        # embedding lookup (single row) + grid-invariant context projection, hoisted
        # out of the kernel:  fused_bias = context @ W_ctx + b_in   (shape (1, C_bb))
        context = self.embedding_table[idx:idx + 1]                 # (1, C_ctx)
        fused_bias = context @ self.w_ctx + self.b_in               # (1, C_bb)

        w_head_pad, b_head_pad = self.seg_heads_padded[idx]         # static head select
        n_cls = self.num_classes[idx]

        logits_pad = multi_space_forward(
            data_dict['coord_feat'], fused_bias, self.w_in,
            w_head_pad, b_head_pad,
            tile_n=tile_n, compute_dtype=compute_dtype)

        # slice the lane-padded output back to the real class count (glue)
        seg_logits = logits_pad[:, :n_cls]

        # eval path, no 'segment' supplied -> logits only
        # TODO(synk): training / loss path (build_criteria) not translated.
        return dict(seg_logits=seg_logits)


# -----------------------------------------------------------------------------
# Pure-JAX reference for sanity checking
# -----------------------------------------------------------------------------
def _reference(model, data_dict, compute_dtype=jnp.float32):
    idx = model.conditions.index(data_dict['condition'][0])
    context = model.embedding_table[idx:idx + 1]
    fused_bias = context @ model.w_ctx + model.b_in
    x = data_dict['coord_feat'].astype(compute_dtype)
    feat = jnp.dot(x, model.w_in.astype(compute_dtype),
                   preferred_element_type=jnp.float32) + fused_bias
    feat = jnp.maximum(feat, 0.0)
    w_head, b_head = model.seg_heads[idx]
    logits = jnp.dot(feat.astype(compute_dtype), w_head.astype(compute_dtype),
                     preferred_element_type=jnp.float32) + b_head
    return logits


if __name__ == "__main__":
    key = jax.random.PRNGKey(0)
    k_x, _ = jax.random.split(key)

    N, C_IN = 256, 6                       # small point cloud: N points, xyz+rgb
    x = jax.random.normal(k_x, (N, C_IN), jnp.float32)

    data_dict = {
        'condition': ['ScanNet'],          # -> head index 1, num_classes = 20
        'coord': x[:, :3],
        'coord_feat': x,
    }

    model = MultiSpaceTrainingPallas(in_channels=C_IN)

    # f32 compute path: tight check against the pure-JAX reference.
    out = model(data_dict, compute_dtype=jnp.float32)
    seg_logits = jax.block_until_ready(out['seg_logits'])
    ref = _reference(model, data_dict, jnp.float32)
    assert seg_logits.shape == (N, model.num_classes[1])
    assert jnp.allclose(seg_logits, ref, atol=1e-4, rtol=1e-4)

    # bf16 compute path (HBM-bound fast path on v6e/v7x): looser check vs bf16 reference.
    out_bf16 = model(data_dict, compute_dtype=jnp.bfloat16)
    seg_bf16 = jax.block_until_ready(out_bf16['seg_logits'])
    ref_bf16 = _reference(model, data_dict, jnp.bfloat16)
    assert seg_bf16.shape == (N, model.num_classes[1])
    assert jnp.allclose(seg_bf16, ref_bf16, atol=2e-2, rtol=2e-2)

    print("KERNEL_OK")
</pallas_src>

<mosaic_0001>
module attributes {stable_mosaic.version = 11 : i64} {
  func.func @_msw_kernel(%arg0: i32, %arg1: memref<256x6xf32, #tpu.memory_space<vmem>>, %arg2: memref<6x96xf32, #tpu.memory_space<vmem>>, %arg3: memref<1x96xf32, #tpu.memory_space<vmem>>, %arg4: memref<96x128xf32, #tpu.memory_space<vmem>>, %arg5: memref<1x128xf32, #tpu.memory_space<vmem>>, %arg6: memref<256x128xf32, #tpu.memory_space<vmem>>) attributes {dimension_semantics = [#tpu.dimension_semantics<parallel>], iteration_bounds = array<i64: 1>, scalar_prefetch = 0 : i64, scratch_operands = 0 : i64, tpu.core_type = #tpu.core_type<tc>, window_params = [{transform_indices = @transform_0, window_bounds = array<i64: 256, 6>}, {pipeline_mode = #tpu.pipeline_mode<synchronous>, transform_indices = @transform_1, window_bounds = array<i64: 6, 96>}, {pipeline_mode = #tpu.pipeline_mode<synchronous>, transform_indices = @transform_2, window_bounds = array<i64: 1, 96>}, {pipeline_mode = #tpu.pipeline_mode<synchronous>, transform_indices = @transform_3, window_bounds = array<i64: 96, 128>}, {pipeline_mode = #tpu.pipeline_mode<synchronous>, transform_indices = @transform_4, window_bounds = array<i64: 1, 128>}, {transform_indices = @transform_5, window_bounds = array<i64: 256, 128>}]} {
    %c0 = arith.constant 0 : index
    %c0_0 = arith.constant 0 : index
    %0 = vector.load %arg1[%c0, %c0_0] : memref<256x6xf32, #tpu.memory_space<vmem>>, vector<256x6xf32>
    %c0_1 = arith.constant 0 : index
    %c0_2 = arith.constant 0 : index
    %1 = vector.load %arg2[%c0_1, %c0_2] : memref<6x96xf32, #tpu.memory_space<vmem>>, vector<6x96xf32>
    %cst = arith.constant dense<0.000000e+00> : vector<256x96xf32>
    %2 = tpu.matmul %0, %1, %cst {dimension_numbers = #tpu.dot_dimension_numbers<[1], [0], [0], [1], [0, 0, 1, 1], [], []>} : vector<256x6xf32>, vector<6x96xf32>, vector<256x96xf32> -> vector<256x96xf32>
    %c0_3 = arith.constant 0 : index
    %c0_4 = arith.constant 0 : index
    %3 = vector.load %arg3[%c0_3, %c0_4] : memref<1x96xf32, #tpu.memory_space<vmem>>, vector<1x96xf32>
    %4 = vector.broadcast %3 : vector<1x96xf32> to vector<256x96xf32>
    %5 = arith.addf %2, %4 : vector<256x96xf32>
    %cst_5 = arith.constant 0.000000e+00 : f32
    %6 = vector.broadcast %cst_5 : f32 to vector<256x96xf32>
    %7 = arith.maximumf %5, %6 : vector<256x96xf32>
    %c0_6 = arith.constant 0 : index
    %c0_7 = arith.constant 0 : index
    %8 = vector.load %arg4[%c0_6, %c0_7] : memref<96x128xf32, #tpu.memory_space<vmem>>, vector<96x128xf32>
    %cst_8 = arith.constant dense<0.000000e+00> : vector<256x128xf32>
    %9 = tpu.matmul %7, %8, %cst_8 {dimension_numbers = #tpu.dot_dimension_numbers<[1], [0], [0], [1], [0, 0, 1, 1], [], []>} : vector<256x96xf32>, vector<96x128xf32>, vector<256x128xf32> -> vector<256x128xf32>
    %c0_9 = arith.constant 0 : index
    %c0_10 = arith.constant 0 : index
    %10 = vector.load %arg5[%c0_9, %c0_10] : memref<1x128xf32, #tpu.memory_space<vmem>>, vector<1x128xf32>
    %11 = vector.broadcast %10 : vector<1x128xf32> to vector<256x128xf32>
    %12 = arith.addf %9, %11 : vector<256x128xf32>
    %c0_11 = arith.constant 0 : index
    %c0_12 = arith.constant 0 : index
    %13 = vector.load %arg6[%c0_11, %c0_12] : memref<256x128xf32, #tpu.memory_space<vmem>>, vector<256x128xf32>
    tpu.vector_store %arg6[%c0_11, %c0_12], %12 {strides = array<i32>} : memref<256x128xf32, #tpu.memory_space<vmem>>, vector<256x128xf32>,
    return
  }
  func.func @transform_0(%arg0: i32) -> (i32, i32) {
    %c0_i32 = arith.constant 0 : i32
    %c0_i32_0 = arith.constant 0 : i32
    return %arg0, %c0_i32 : i32, i32
  }
  func.func @transform_1(%arg0: i32) -> (i32, i32) {
    %c0_i32 = arith.constant 0 : i32
    %c0_i32_0 = arith.constant 0 : i32
    %c0_i32_1 = arith.constant 0 : i32
    return %c0_i32, %c0_i32_0 : i32, i32
  }
  func.func @transform_2(%arg0: i32) -> (i32, i32) {
    %c0_i32 = arith.constant 0 : i32
    %c0_i32_0 = arith.constant 0 : i32
    %c0_i32_1 = arith.constant 0 : i32
    return %c0_i32, %c0_i32_0 : i32, i32
  }
  func.func @transform_3(%arg0: i32) -> (i32, i32) {
    %c0_i32 = arith.constant 0 : i32
    %c0_i32_0 = arith.constant 0 : i32
    %c0_i32_1 = arith.constant 0 : i32
    return %c0_i32, %c0_i32_0 : i32, i32
  }
  func.func @transform_4(%arg0: i32) -> (i32, i32) {
    %c0_i32 = arith.constant 0 : i32
    %c0_i32_0 = arith.constant 0 : i32
    %c0_i32_1 = arith.constant 0 : i32
    return %c0_i32, %c0_i32_0 : i32, i32
  }
  func.func @transform_5(%arg0: i32) -> (i32, i32) {
    %c0_i32 = arith.constant 0 : i32
    %c0_i32_0 = arith.constant 0 : i32
    return %arg0, %c0_i32 : i32, i32
  }
}

</mosaic_0001>

<bundles_post_ra>
// kernel: tpu_custom_call.1
= control target key start
LH: loop header
LB: loop body
LE: loop exit
PB: predicated region body
PF: predicated region fallthrough
CT: control target
= control target key end

     0   :  { %vm158_vm0 = vcmask 1045504   ;;  %vm61_vm1 = vcmask 48128   ;;  %s1455_s0 = inlined_call_operand.vmem [shape: f32[256,6], index: 0, kind: input, shape index: {}]   ;;  %s1456_s1 = inlined_call_operand.vmem [shape: f32[6,96], index: 1, kind: input, shape index: {}]   ;;  %s1457_s2 = inlined_call_operand.vmem [shape: f32[1,96], index: 2, kind: input, shape index: {}]   ;;  %s1458_s3 = inlined_call_operand.vmem [shape: f32[96,128], index: 3, kind: input, shape index: {}]   ;;  %s1459_s4 = inlined_call_operand.vmem [shape: f32[1,128], index: 4, kind: input, shape index: {}]   ;;  %s1460_s5 = inlined_call_operand.hbm [shape: f32[256,128], index: 5, kind: output, shape index: {}]  }
   0x1   :  { %v53_v0 = vld [vmem:[%s1456_s1] sm:$0x3f]  ;;  %v22_v2 = vld [vmem:[%s1455_s0 + $0x8] sm:$0xff]  ;;  %v23_v3 = vld [vmem:[%s1455_s0 + $0x10] sm:$0xff] }
   0x2   :  { %v21_v1 = vld [vmem:[%s1455_s0] sm:$0xff]  ;;  %952 = vmatprep.subr.msk.mxu0 %vm158_vm0, %v53_v0  ;;  %v24_v4 = vld [vmem:[%s1455_s0 + $0x18] sm:$0xff]  ;;  %v26_v6 = vld [vmem:[%s1455_s0 + $0x28] sm:$0xff] }
   0x3   :  { %954 = vmatprep.mubr.msk.f32.mxu0 %vm61_vm1, %v21_v1  ;;  %953 = vmatpush3.msk.msra.mxu0 %vm158_vm0, %v53_v0  ;;  %v25_v5 = vld [vmem:[%s1455_s0 + $0x20] sm:$0xff]  ;;  %v27_v7 = vld [vmem:[%s1455_s0 + $0x30] sm:$0xff]  ;;  %v420_v9 = vld [vmem:[%s1458_s3 + $0x8] sm:$0xff] }
   0x4   :  { %955 = vmatmul.mubr.msk.f32.vlgmr.msra.gmra.mrb[0].mxu0 %vm61_vm1, %v22_v2  ;;  %v419_v8 = vld [vmem:[%s1458_s3] sm:$0xff]  ;;  %v421_v10 = vld [vmem:[%s1458_s3 + $0x10] sm:$0xff]  ;;  %v28_v11 = vld [vmem:[%s1455_s0 + $0x38] sm:$0xff] }
   0x5   :  { %957 = vmatprep.mubr.msk.f32.mxu0 %vm61_vm1, %v23_v3  ;;  %v1074_v12 = vpack.c.bf16 %v420_v9, %v419_v8  ;;  %v422_v13 = vld [vmem:[%s1458_s3 + $0x18] sm:$0xff]  ;;  %v29_v14 = vld [vmem:[%s1455_s0 + $0x40] sm:$0xff]  ;;  %v424_v17 = vld [vmem:[%s1458_s3 + $0x28] sm:$0xff] }
   0x6   :  { %v1078_v15 = vpack.c.bf16 %v422_v13, %v421_v10  ;;  %v423_v16 = vld [vmem:[%s1458_s3 + $0x20] sm:$0xff] }
   0x7   :  { %1075 = vmatprep.subr.bf16.mxu0 %v1074_v12  ;;  %1098 = vmatprep.subr.bf16.mxu1 %v1074_v12 }
   0x8   :  { %958 = vmatmul.mubr.msk.f32.gmra.mrb[2].mxu0 %vm61_vm1, %v24_v4 }
   0x9   :  { %960 = vmatprep.mubr.msk.f32.mxu0 %vm61_vm1, %v25_v5 }
   0xc   :  { %961 = vmatmul.mubr.msk.f32.gmra.mrb[4].mxu0 %vm61_vm1, %v26_v6 }
   0xd   :  { %963 = vmatprep.mubr.msk.f32.mxu0 %vm61_vm1, %v27_v7 }
   0xe   :  { %10 = vsyncpa [#allocation3], 0  ;;  %1104 = vmatpush3.bf16.msra.mxu1 %v1074_v12  ;;  %v30_v18 = vld [vmem:[%s1455_s0 + $0x48] sm:$0xff]  ;;  %1077 = vmatpush3.bf16.msra.mxu0 %v1074_v12  ;;  %v31_v19 = vld [vmem:[%s1455_s0 + $0x50] sm:$0xff]  ;;  %v1082_v20 = vpack.c.bf16 %v424_v17, %v423_v16  ;;  %vm438_vm2 = vcmask 785408  }
   0xf   :  { %1079 = vmatprep.subr.bf16.mxu0 %v1078_v15  ;;  %1099 = vmatprep.subr.bf16.mxu1 %v1078_v15  ;;  %v425_v21 = vld [vmem:[%s1458_s3 + $0x30] sm:$0xff]  ;;  %v426_v22 = vld [vmem:[%s1458_s3 + $0x38] sm:$0xff]  ;;  %v33_v24 = vld [vmem:[%s1455_s0 + $0x60] sm:$0xff] }
  0x10   :  { %964 = vmatmul.mubr.msk.f32.gmra.mrb[6].mxu0 %vm61_vm1, %v28_v11  ;;  %v32_v23 = vld [vmem:[%s1455_s0 + $0x58] sm:$0xff]  ;;  %v1086_v25 = vpack.c.bf16 %v426_v22, %v425_v21  ;;  %v427_v26 = vld [vmem:[%s1458_s3 + $0x40] sm:$0xff]  ;;  %v428_v27 = vld [vmem:[%s1458_s3 + $0x48] sm:$0xff] }
  0x11   :  { %966 = vmatprep.mubr.msk.f32.mxu0 %vm61_vm1, %v29_v14  ;;  %v34_v28 = vld [vmem:[%s1455_s0 + $0x68] sm:$0xff]  ;;  %v35_v29 = vld [vmem:[%s1455_s0 + $0x70] sm:$0xff]  ;;  %v1090_v30 = vpack.c.bf16 %v428_v27, %v427_v26  ;;  %v36_v31 = vld [vmem:[%s1455_s0 + $0x78] sm:$0xff] }
  0x12   :  { %1105 = vmatpush3.bf16.msra.mxu1 %v1078_v15  ;;  %1081 = vmatpush3.bf16.msra.mxu0 %v1078_v15  ;;  %v37_v32 = vld [vmem:[%s1455_s0 + $0x80] sm:$0xff]  ;;  %v38_v33 = vld [vmem:[%s1455_s0 + $0x88] sm:$0xff]  ;;  %v39_v34 = vld [vmem:[%s1455_s0 + $0x90] sm:$0xff] }
  0x13   :  { %1083 = vmatprep.subr.bf16.mxu0 %v1082_v20  ;;  %1100 = vmatprep.subr.bf16.mxu1 %v1082_v20  ;;  %v40_v35 = vld [vmem:[%s1455_s0 + $0x98] sm:$0xff]  ;;  %v41_v36 = vld [vmem:[%s1455_s0 + $0xa0] sm:$0xff]  ;;  %v42_v37 = vld [vmem:[%s1455_s0 + $0xa8] sm:$0xff] }
  0x14   :  { %967 = vmatmul.mubr.msk.f32.gmra.mrb[8].mxu0 %vm61_vm1, %v30_v18  ;;  %v43_v38 = vld [vmem:[%s1455_s0 + $0xb0] sm:$0xff]  ;;  %v44_v39 = vld [vmem:[%s1455_s0 + $0xb8] sm:$0xff]  ;;  %v45_v40 = vld [vmem:[%s1455_s0 + $0xc0] sm:$0xff] }
  0x15   :  { %969 = vmatprep.mubr.msk.f32.mxu0 %vm61_vm1, %v31_v19  ;;  %v46_v41 = vld [vmem:[%s1455_s0 + $0xc8] sm:$0xff]  ;;  %v47_v42 = vld [vmem:[%s1455_s0 + $0xd0] sm:$0xff]  ;;  %v48_v43 = vld [vmem:[%s1455_s0 + $0xd8] sm:$0xff] }
  0x16   :  { %1106 = vmatpush3.bf16.msra.mxu1 %v1082_v20  ;;  %1085 = vmatpush3.bf16.msra.mxu0 %v1082_v20  ;;  %v49_v44 = vld [vmem:[%s1455_s0 + $0xe0] sm:$0xff]  ;;  %v50_v45 = vld [vmem:[%s1455_s0 + $0xe8] sm:$0xff]  ;;  %v51_v46 = vld [vmem:[%s1455_s0 + $0xf0] sm:$0xff] }
  0x17   :  { %1087 = vmatprep.subr.bf16.mxu0 %v1086_v25  ;;  %1101 = vmatprep.subr.bf16.mxu1 %v1086_v25  ;;  %v52_v47 = vld [vmem:[%s1455_s0 + $0xf8] sm:$0xff]  ;;  %v429_v48 = vld [vmem:[%s1458_s3 + $0x50] sm:$0xff]  ;;  %v1340_v51 = vld [vmem:[%s1457_s2] ss:$0 sm:$0xff] }
  0x18   :  { %970 = vmatmul.mubr.msk.f32.gmra.mrb[10].mxu0 %vm61_vm1, %v32_v23  ;;  %v430_v49 = vld [vmem:[%s1458_s3 + $0x58] sm:$0xff]  ;;  %s1137_s3 = smov [#allocation2]  }
  0x19   :  { %972 = vmatprep.mubr.msk.f32.mxu0 %vm61_vm1, %v33_v24  ;;  %v1094_v50 = vpack.c.bf16 %v430_v49, %v429_v48 }
  0x1a   :  { %1107 = vmatpush3.bf16.msra.mxu1 %v1086_v25  ;;  %1089 = vmatpush3.bf16.msra.mxu0 %v1086_v25 }
  0x1b   :  { %1091 = vmatprep.subr.bf16.mxu0 %v1090_v30  ;;  %1102 = vmatprep.subr.bf16.mxu1 %v1090_v30 }
  0x1c   :  { %973 = vmatmul.mubr.msk.f32.gmra.mrb[12].mxu0 %vm61_vm1, %v34_v28 }
  0x1d   :  { %975 = vmatprep.mubr.msk.f32.mxu0 %vm61_vm1, %v35_v29 }
  0x1e   :  { %1108 = vmatpush3.bf16.msra.mxu1 %v1090_v30  ;;  %1093 = vmatpush3.bf16.msra.mxu0 %v1090_v30 }
  0x1f   :  { %1095 = vmatprep.subr.bf16.mxu0 %v1094_v50  ;;  %1103 = vmatprep.subr.bf16.mxu1 %v1094_v50 }
  0x20   :  { %976 = vmatmul.mubr.msk.f32.gmra.mrb[14].mxu0 %vm61_vm1, %v36_v31 }
  0x21   :  { %978 = vmatprep.mubr.msk.f32.mxu0 %vm61_vm1, %v37_v32 }
  0x22   :  { %1097 = vmatpush3.bf16.msra.mxu0 %v1094_v50  ;;  %1109 = vmatpush3.bf16.msra.mxu1 %v1094_v50 }
  0x24   :  { %979 = vmatmul.mubr.msk.f32.gmra.mrb[16].mxu0 %vm61_vm1, %v38_v33 }
  0x25   :  { %981 = vmatprep.mubr.msk.f32.mxu0 %vm61_vm1, %v39_v34 }
  0x28   :  { %982 = vmatmul.mubr.msk.f32.gmra.mrb[18].mxu0 %vm61_vm1, %v40_v35 }
  0x29   :  { %984 = vmatprep.mubr.msk.f32.mxu0 %vm61_vm1, %v41_v36 }
  0x2c   :  { %985 = vmatmul.mubr.msk.f32.gmra.mrb[20].mxu0 %vm61_vm1, %v42_v37 }
  0x2d   :  { %987 = vmatprep.mubr.msk.f32.mxu0 %vm61_vm1, %v43_v38 }
  0x30   :  { %988 = vmatmul.mubr.msk.f32.gmra.mrb[22].mxu0 %vm61_vm1, %v44_v39 }
  0x31   :  { %990 = vmatprep.mubr.msk.f32.mxu0 %vm61_vm1, %v45_v40 }
  0x34   :  { %991 = vmatmul.mubr.msk.f32.gmra.mrb[24].mxu0 %vm61_vm1, %v46_v41 }
  0x35   :  { %993 = vmatprep.mubr.msk.f32.mxu0 %vm61_vm1, %v47_v42 }
  0x38   :  { %994 = vmatmul.mubr.msk.f32.gmra.mrb[26].mxu0 %vm61_vm1, %v48_v43 }
  0x39   :  { %996 = vmatprep.mubr.msk.f32.mxu0 %vm61_vm1, %v49_v44 }
  0x3c   :  { %997 = vmatmul.mubr.msk.f32.gmra.mrb[28].mxu0 %vm61_vm1, %v50_v45 }
  0x3d   :  { %999 = vmatprep.mubr.msk.f32.mxu0 %vm61_vm1, %v51_v46 }
  0x40   :  { %1000 = vmatmul.mubr.msk.f32.gmra.mrb[30].mxu0 %vm61_vm1, %v52_v47 }
  0xd7   :  { %v956_v52 = vpop.f32.mrb[0].mxu0 }
  0xd8   :  { %v234_v53 = vadd.f32 %v956_v52, %v1340_v51  ;;  %v228_v54 = vpop.f32.mrb[1].mxu0 }
  0xd9   :  { %v229_v55 = vadd.f32 %v1340_v51, %v228_v54 }
  0xda   :  { %v388_v58 = vmax.f32 %v234_v53, 0.0 }
  0xdb   :  { %v387_v56 = vmax.f32 %v229_v55, 0.0  ;;  %v959_v57 = vpop.f32.mrb[2].mxu0 }
  0xdc   :  { %v244_v59 = vadd.f32 %v959_v57, %v1340_v51  ;;  %v238_v60 = vpop.f32.mrb[3].mxu0 }
  0xdd   :  { %v239_v61 = vadd.f32 %v1340_v51, %v238_v60  ;;  %1026 = vmatprep.mubr.msk.f32.mxu0 %vm438_vm2, %v387_v56 }
  0xde   :  { %1027 = vmatmul.mubr.msk.f32.vlgmr.msra.gmra.mrb[32].mxu0 %vm438_vm2, %v388_v58  ;;  %v390_v0 = vmax.f32 %v244_v59, 0.0 }
  0xdf   :  { %v389_v62 = vmax.f32 %v239_v61, 0.0  ;;  %v962_v63 = vpop.f32.mrb[4].mxu0 }
  0xe0   :  { %v254_v1 = vadd.f32 %v962_v63, %v1340_v51  ;;  %v248_v2 = vpop.f32.mrb[5].mxu0 }
  0xe1   :  { %v249_v3 = vadd.f32 %v1340_v51, %v248_v2  ;;  %1029 = vmatprep.mubr.msk.f32.mxu0 %vm438_vm2, %v389_v62 }
  0xe2   :  { %1030 = vmatmul.mubr.msk.f32.gmra.mrb[34].mxu0 %vm438_vm2, %v390_v0  ;;  %v392_v6 = vmax.f32 %v254_v1, 0.0 }
  0xe3   :  { %v391_v4 = vmax.f32 %v249_v3, 0.0  ;;  %v965_v5 = vpop.f32.mrb[6].mxu0 }
  0xe4   :  { %v264_v7 = vadd.f32 %v965_v5, %v1340_v51  ;;  %v258_v8 = vpop.f32.mrb[7].mxu0 }
  0xe5   :  { %v259_v9 = vadd.f32 %v1340_v51, %v258_v8  ;;  %1032 = vmatprep.mubr.msk.f32.mxu1 %vm438_vm2, %v391_v4 }
  0xe6   :  { %1033 = vmatmul.mubr.msk.f32.vlgmr.msra.gmra.mrb[0].mxu1 %vm438_vm2, %v392_v6  ;;  %v394_v12 = vmax.f32 %v264_v7, 0.0 }
  0xe7   :  { %v393_v10 = vmax.f32 %v259_v9, 0.0  ;;  %v968_v11 = vpop.f32.mrb[8].mxu0 }
  0xe8   :  { %v274_v13 = vadd.f32 %v968_v11, %v1340_v51  ;;  %v268_v14 = vpop.f32.mrb[9].mxu0 }
  0xe9   :  { %v269_v15 = vadd.f32 %v1340_v51, %v268_v14  ;;  %1035 = vmatprep.mubr.msk.f32.mxu1 %vm438_vm2, %v393_v10 }
  0xea   :  { %1036 = vmatmul.mubr.msk.f32.gmra.mrb[2].mxu1 %vm438_vm2, %v394_v12  ;;  %v396_v18 = vmax.f32 %v274_v13, 0.0 }
  0xeb   :  { %v395_v16 = vmax.f32 %v269_v15, 0.0  ;;  %v971_v17 = vpop.f32.mrb[10].mxu0 }
  0xec   :  { %v284_v19 = vadd.f32 %v971_v17, %v1340_v51  ;;  %v278_v20 = vpop.f32.mrb[11].mxu0 }
  0xed   :  { %v279_v21 = vadd.f32 %v1340_v51, %v278_v20  ;;  %1038 = vmatprep.mubr.msk.f32.mxu1 %vm438_vm2, %v395_v16 }
  0xee   :  { %1039 = vmatmul.mubr.msk.f32.gmra.mrb[4].mxu1 %vm438_vm2, %v396_v18  ;;  %v398_v24 = vmax.f32 %v284_v19, 0.0 }
  0xef   :  { %v397_v22 = vmax.f32 %v279_v21, 0.0  ;;  %v974_v23 = vpop.f32.mrb[12].mxu0  ;;  %v1409_v21 = vld [vmem:[%s1459_s4] ss:$0 sm:$0xff]  ;;  %s797_s4 = sshll.u32 %s1137_s3, 4  ;;  %s798_s4 = int_to_ptr.vmem [resolvable:$true] %s797_s4 }
  0xf0   :  { %v294_v25 = vadd.f32 %v974_v23, %v1340_v51  ;;  %v288_v26 = vpop.f32.mrb[13].mxu0  ;;  %s1113_s6 = scalar_lea.vmem %s798_s4, 4096  ;;  %p1118_p1 = scmp.lt.s32.totalorder %s798_s4, %s798_s4 }
  0xf1   :  { %v289_v27 = vadd.f32 %v1340_v51, %v288_v26  ;;  %1041 = vmatprep.mubr.msk.f32.mxu1 %vm438_vm2, %v397_v22  ;;  %p1114_p0 = scmp.ne.s32.totalorder %s798_s4, %s1113_s6  ;;  %p1119_p2 = scmp.lt.s32.totalorder %s1113_s6, %s1113_s6 }
  0xf2   :  { %1042 = vmatmul.mubr.msk.f32.gmra.mrb[6].mxu1 %vm438_vm2, %v398_v24  ;;  %v400_v30 = vmax.f32 %v294_v25, 0.0 }
  0xf3   :  { %v399_v28 = vmax.f32 %v289_v27, 0.0  ;;  %v977_v29 = vpop.f32.mrb[14].mxu0  ;;  %p1120_p3 = por %p1119_p2, %p1118_p1 }
  0xf4   :  { %v304_v31 = vadd.f32 %v977_v29, %v1340_v51  ;;  %v298_v32 = vpop.f32.mrb[15].mxu0 }
  0xf5   :  { %v299_v33 = vadd.f32 %v1340_v51, %v298_v32  ;;  %1044 = vmatprep.mubr.msk.f32.mxu1 %vm438_vm2, %v399_v28  ;;  %p1121_p4 = pnand %p1120_p3, %p1114_p0 }
  0xf6   :  { %1045 = vmatmul.mubr.msk.f32.gmra.mrb[8].mxu1 %vm438_vm2, %v400_v30  ;;  %v402_v36 = vmax.f32 %v304_v31, 0.0 }
  0xf7   :  { %v401_v34 = vmax.f32 %v299_v33, 0.0  ;;  %v980_v35 = vpop.f32.mrb[16].mxu0 }
  0xf8   :  { %v314_v37 = vadd.f32 %v980_v35, %v1340_v51  ;;  %v308_v38 = vpop.f32.mrb[17].mxu0 }
  0xf9   :  { %v309_v39 = vadd.f32 %v1340_v51, %v308_v38  ;;  %1047 = vmatprep.mubr.msk.f32.mxu1 %vm438_vm2, %v401_v34 }
  0xfa   :  { %1048 = vmatmul.mubr.msk.f32.gmra.mrb[10].mxu1 %vm438_vm2, %v402_v36  ;;  %v404_v42 = vmax.f32 %v314_v37, 0.0 }
  0xfb   :  { %v403_v40 = vmax.f32 %v309_v39, 0.0  ;;  %v983_v41 = vpop.f32.mrb[18].mxu0 }
  0xfc   :  { %v324_v43 = vadd.f32 %v983_v41, %v1340_v51  ;;  %v318_v44 = vpop.f32.mrb[19].mxu0 }
  0xfd   :  { %v319_v45 = vadd.f32 %v1340_v51, %v318_v44  ;;  %1050 = vmatprep.mubr.msk.f32.mxu1 %vm438_vm2, %v403_v40 }
  0xfe   :  { %1051 = vmatmul.mubr.msk.f32.gmra.mrb[12].mxu1 %vm438_vm2, %v404_v42  ;;  %v406_v48 = vmax.f32 %v324_v43, 0.0 }
  0xff   :  { %v405_v46 = vmax.f32 %v319_v45, 0.0  ;;  %v986_v47 = vpop.f32.mrb[20].mxu0 }
 0x100   :  { %v334_v49 = vadd.f32 %v986_v47, %v1340_v51  ;;  %v328_v50 = vpop.f32.mrb[21].mxu0 }
 0x101   :  { %v329_v52 = vadd.f32 %v1340_v51, %v328_v50  ;;  %1053 = vmatprep.mubr.msk.f32.mxu1 %vm438_vm2, %v405_v46 }
 0x102   :  { %1054 = vmatmul.mubr.msk.f32.gmra.mrb[14].mxu1 %vm438_vm2, %v406_v48  ;;  %v408_v55 = vmax.f32 %v334_v49, 0.0 }
 0x103   :  { %v407_v53 = vmax.f32 %v329_v52, 0.0  ;;  %v989_v54 = vpop.f32.mrb[22].mxu0 }
 0x104   :  { %v344_v56 = vadd.f32 %v989_v54, %v1340_v51  ;;  %v338_v57 = vpop.f32.mrb[23].mxu0 }
 0x105   :  { %v339_v58 = vadd.f32 %v1340_v51, %v338_v57  ;;  %1056 = vmatprep.mubr.msk.f32.mxu1 %vm438_vm2, %v407_v53 }
 0x106   :  { %1057 = vmatmul.mubr.msk.f32.gmra.mrb[16].mxu1 %vm438_vm2, %v408_v55  ;;  %v410_v61 = vmax.f32 %v344_v56, 0.0 }
 0x107   :  { %v409_v59 = vmax.f32 %v339_v58, 0.0  ;;  %v992_v60 = vpop.f32.mrb[24].mxu0 }
 0x108   :  { %v354_v62 = vadd.f32 %v992_v60, %v1340_v51  ;;  %v348_v63 = vpop.f32.mrb[25].mxu0 }
 0x109   :  { %v349_v0 = vadd.f32 %v1340_v51, %v348_v63  ;;  %1059 = vmatprep.mubr.msk.f32.mxu1 %vm438_vm2, %v409_v59 }
 0x10a   :  { %1060 = vmatmul.mubr.msk.f32.gmra.mrb[18].mxu1 %vm438_vm2, %v410_v61  ;;  %v412_v3 = vmax.f32 %v354_v62, 0.0 }
 0x10b   :  { %v411_v1 = vmax.f32 %v349_v0, 0.0  ;;  %v995_v2 = vpop.f32.mrb[26].mxu0 }
 0x10c   :  { %v364_v4 = vadd.f32 %v995_v2, %v1340_v51  ;;  %v358_v5 = vpop.f32.mrb[27].mxu0 }
 0x10d   :  { %v359_v6 = vadd.f32 %v1340_v51, %v358_v5  ;;  %1062 = vmatprep.mubr.msk.f32.mxu1 %vm438_vm2, %v411_v1 }
 0x10e   :  { %1063 = vmatmul.mubr.msk.f32.gmra.mrb[20].mxu1 %vm438_vm2, %v412_v3  ;;  %v414_v9 = vmax.f32 %v364_v4, 0.0 }
 0x10f   :  { %v413_v7 = vmax.f32 %v359_v6, 0.0  ;;  %v998_v8 = vpop.f32.mrb[28].mxu0 }
 0x110   :  { %v374_v10 = vadd.f32 %v998_v8, %v1340_v51  ;;  %v368_v11 = vpop.f32.mrb[29].mxu0 }
 0x111   :  { %v369_v12 = vadd.f32 %v1340_v51, %v368_v11  ;;  %1065 = vmatprep.mubr.msk.f32.mxu1 %vm438_vm2, %v413_v7 }
 0x112   :  { %1066 = vmatmul.mubr.msk.f32.gmra.mrb[22].mxu1 %vm438_vm2, %v414_v9  ;;  %v416_v15 = vmax.f32 %v374_v10, 0.0 }
 0x113   :  { %v415_v13 = vmax.f32 %v369_v12, 0.0  ;;  %v1001_v14 = vpop.f32.mrb[30].mxu0 }
 0x114   :  { %v384_v16 = vadd.f32 %v1001_v14, %v1340_v51  ;;  %v378_v17 = vpop.f32.mrb[31].mxu0 }
 0x115   :  { %v379_v18 = vadd.f32 %v1340_v51, %v378_v17  ;;  %1068 = vmatprep.mubr.msk.f32.mxu1 %vm438_vm2, %v415_v13 }
 0x116   :  { %1069 = vmatmul.mubr.msk.f32.gmra.mrb[24].mxu1 %vm438_vm2, %v416_v15  ;;  %v418_v20 = vmax.f32 %v384_v16, 0.0 }
 0x117   :  { %v417_v19 = vmax.f32 %v379_v18, 0.0 }
 0x119   :  { %1071 = vmatprep.mubr.msk.f32.mxu1 %vm438_vm2, %v417_v19 }
 0x11a   :  { %1072 = vmatmul.mubr.msk.f32.gmra.mrb[26].mxu1 %vm438_vm2, %v418_v20 }
 0x1b1   :  { %v1028_v22 = vpop.f32.mrb[32].mxu0 }
 0x1b2   :  { %v607_v23 = vadd.f32 %v1028_v22, %v1409_v21  ;;  %v601_v24 = vpop.f32.mrb[33].mxu0 }
 0x1b3   :  { %v602_v51 = vadd.f32 %v1409_v21, %v601_v24 }
 0x1b4   :  { %761 = vst [vmem:[#allocation2 + $0x8] sm:$0xff] %v607_v23 }
 0x1b5   :  { %760 = vst [vmem:[#allocation2] sm:$0xff] %v602_v51  ;;  %v1031_v25 = vpop.f32.mrb[34].mxu0 }
 0x1b6   :  { %v617_v26 = vadd.f32 %v1031_v25, %v1409_v21  ;;  %v611_v27 = vpop.f32.mrb[35].mxu0 }
 0x1b7   :  { %v612_v28 = vadd.f32 %v1409_v21, %v611_v27 }
 0x1b8   :  { %763 = vst [vmem:[#allocation2 + $0x18] sm:$0xff] %v617_v26 }
 0x1b9   :  { %762 = vst [vmem:[#allocation2 + $0x10] sm:$0xff] %v612_v28  ;;  %v1034_v29 = vpop.f32.mrb[0].mxu1 }
 0x1ba   :  { %v627_v30 = vadd.f32 %v1034_v29, %v1409_v21  ;;  %v621_v31 = vpop.f32.mrb[1].mxu1 }
 0x1bb   :  { %v622_v32 = vadd.f32 %v1409_v21, %v621_v31 }
 0x1bc   :  { %765 = vst [vmem:[#allocation2 + $0x28] sm:$0xff] %v627_v30 }
 0x1bd   :  { %764 = vst [vmem:[#allocation2 + $0x20] sm:$0xff] %v622_v32  ;;  %v1037_v33 = vpop.f32.mrb[2].mxu1 }
 0x1be   :  { %v637_v34 = vadd.f32 %v1037_v33, %v1409_v21  ;;  %v631_v35 = vpop.f32.mrb[3].mxu1 }
 0x1bf   :  { %v632_v36 = vadd.f32 %v1409_v21, %v631_v35 }
 0x1c0   :  { %767 = vst [vmem:[#allocation2 + $0x38] sm:$0xff] %v637_v34 }
 0x1c1   :  { %766 = vst [vmem:[#allocation2 + $0x30] sm:$0xff] %v632_v36  ;;  %v1040_v37 = vpop.f32.mrb[4].mxu1 }
 0x1c2   :  { %v647_v38 = vadd.f32 %v1040_v37, %v1409_v21  ;;  %v641_v39 = vpop.f32.mrb[5].mxu1 }
 0x1c3   :  { %v642_v40 = vadd.f32 %v1409_v21, %v641_v39 }
 0x1c4   :  { %769 = vst [vmem:[#allocation2 + $0x48] sm:$0xff] %v647_v38 }
 0x1c5   :  { %768 = vst [vmem:[#allocation2 + $0x40] sm:$0xff] %v642_v40  ;;  %v1043_v41 = vpop.f32.mrb[6].mxu1 }
 0x1c6   :  { %v657_v42 = vadd.f32 %v1043_v41, %v1409_v21  ;;  %v651_v43 = vpop.f32.mrb[7].mxu1 }
 0x1c7   :  { %v652_v44 = vadd.f32 %v1409_v21, %v651_v43 }
 0x1c8   :  { %771 = vst [vmem:[#allocation2 + $0x58] sm:$0xff] %v657_v42 }
 0x1c9   :  { %770 = vst [vmem:[#allocation2 + $0x50] sm:$0xff] %v652_v44  ;;  %v1046_v45 = vpop.f32.mrb[8].mxu1 }
 0x1ca   :  { %v667_v46 = vadd.f32 %v1046_v45, %v1409_v21  ;;  %v661_v47 = vpop.f32.mrb[9].mxu1 }
 0x1cb   :  { %v662_v48 = vadd.f32 %v1409_v21, %v661_v47 }
 0x1cc   :  { %773 = vst [vmem:[#allocation2 + $0x68] sm:$0xff] %v667_v46 }
 0x1cd   :  { %772 = vst [vmem:[#allocation2 + $0x60] sm:$0xff] %v662_v48  ;;  %v1049_v49 = vpop.f32.mrb[10].mxu1 }
 0x1ce   :  { %v677_v50 = vadd.f32 %v1049_v49, %v1409_v21  ;;  %v671_v52 = vpop.f32.mrb[11].mxu1 }
 0x1cf   :  { %v672_v53 = vadd.f32 %v1409_v21, %v671_v52 }
 0x1d0   :  { %775 = vst [vmem:[#allocation2 + $0x78] sm:$0xff] %v677_v50 }
 0x1d1   :  { %774 = vst [vmem:[#allocation2 + $0x70] sm:$0xff] %v672_v53  ;;  %v1052_v54 = vpop.f32.mrb[12].mxu1 }
 0x1d2   :  { %v687_v55 = vadd.f32 %v1052_v54, %v1409_v21  ;;  %v681_v56 = vpop.f32.mrb[13].mxu1 }
 0x1d3   :  { %v682_v57 = vadd.f32 %v1409_v21, %v681_v56 }
 0x1d4   :  { %777 = vst [vmem:[#allocation2 + $0x88] sm:$0xff] %v687_v55 }
 0x1d5   :  { %776 = vst [vmem:[#allocation2 + $0x80] sm:$0xff] %v682_v57  ;;  %v1055_v58 = vpop.f32.mrb[14].mxu1 }
 0x1d6   :  { %v697_v59 = vadd.f32 %v1055_v58, %v1409_v21  ;;  %v691_v60 = vpop.f32.mrb[15].mxu1 }
 0x1d7   :  { %v692_v61 = vadd.f32 %v1409_v21, %v691_v60 }
 0x1d8   :  { %779 = vst [vmem:[#allocation2 + $0x98] sm:$0xff] %v697_v59 }
 0x1d9   :  { %778 = vst [vmem:[#allocation2 + $0x90] sm:$0xff] %v692_v61  ;;  %v1058_v62 = vpop.f32.mrb[16].mxu1 }
 0x1da   :  { %v707_v63 = vadd.f32 %v1058_v62, %v1409_v21  ;;  %v701_v0 = vpop.f32.mrb[17].mxu1 }
 0x1db   :  { %v702_v1 = vadd.f32 %v1409_v21, %v701_v0 }
 0x1dc   :  { %781 = vst [vmem:[#allocation2 + $0xa8] sm:$0xff] %v707_v63 }
 0x1dd   :  { %780 = vst [vmem:[#allocation2 + $0xa0] sm:$0xff] %v702_v1  ;;  %v1061_v2 = vpop.f32.mrb[18].mxu1 }
 0x1de   :  { %v717_v3 = vadd.f32 %v1061_v2, %v1409_v21  ;;  %v711_v4 = vpop.f32.mrb[19].mxu1 }
 0x1df   :  { %v712_v5 = vadd.f32 %v1409_v21, %v711_v4 }
 0x1e0   :  { %783 = vst [vmem:[#allocation2 + $0xb8] sm:$0xff] %v717_v3 }
 0x1e1   :  { %782 = vst [vmem:[#allocation2 + $0xb0] sm:$0xff] %v712_v5  ;;  %v1064_v6 = vpop.f32.mrb[20].mxu1 }
 0x1e2   :  { %v727_v7 = vadd.f32 %v1064_v6, %v1409_v21  ;;  %v721_v8 = vpop.f32.mrb[21].mxu1 }
 0x1e3   :  { %v722_v9 = vadd.f32 %v1409_v21, %v721_v8 }
 0x1e4   :  { %785 = vst [vmem:[#allocation2 + $0xc8] sm:$0xff] %v727_v7 }
 0x1e5   :  { %784 = vst [vmem:[#allocation2 + $0xc0] sm:$0xff] %v722_v9  ;;  %v1067_v10 = vpop.f32.mrb[22].mxu1 }
 0x1e6   :  { %v737_v11 = vadd.f32 %v1067_v10, %v1409_v21  ;;  %v731_v12 = vpop.f32.mrb[23].mxu1 }
 0x1e7   :  { %v732_v13 = vadd.f32 %v1409_v21, %v731_v12 }
 0x1e8   :  { %787 = vst [vmem:[#allocation2 + $0xd8] sm:$0xff] %v737_v11 }
 0x1e9   :  { %786 = vst [vmem:[#allocation2 + $0xd0] sm:$0xff] %v732_v13  ;;  %v1070_v14 = vpop.f32.mrb[24].mxu1 }
 0x1ea   :  { %v747_v15 = vadd.f32 %v1070_v14, %v1409_v21  ;;  %v741_v16 = vpop.f32.mrb[25].mxu1 }
 0x1eb   :  { %v742_v17 = vadd.f32 %v1409_v21, %v741_v16 }
 0x1ec   :  { %789 = vst [vmem:[#allocation2 + $0xe8] sm:$0xff] %v747_v15 }
 0x1ed   :  { %788 = vst [vmem:[#allocation2 + $0xe0] sm:$0xff] %v742_v17  ;;  %v1073_v18 = vpop.f32.mrb[26].mxu1 }
 0x1ee   :  { %v757_v19 = vadd.f32 %v1073_v18, %v1409_v21  ;;  %v751_v20 = vpop.f32.mrb[27].mxu1 }
 0x1ef   :  { %v752_v22 = vadd.f32 %v1409_v21, %v751_v20 }
 0x1f0   :  { %791 = vst [vmem:[#allocation2 + $0xf8] sm:$0xff] %v757_v19 }
 0x1f1   :  { %790 = vst [vmem:[#allocation2 + $0xf0] sm:$0xff] %v752_v22 }
 0x1f2   :  { %1124 = shalt.err (!%p1121_p4)
}
 0x1f3   :  { %s1125_s9 = scalar_lea.hbm %s1460_s5, 4096 }
 0x1f4   :  { %p1126_p5 = scmp.ne.s32.totalorder %s1460_s5, %s1125_s9  ;;  %p1129_p6 = scmp.lt.u32.totalorder %s1125_s9, %s1460_s5 }
 0x1f6   :  { %p1131_p7 = pnand %p1129_p6, %p1126_p5 }
 0x1f8   :  { %1134 = shalt.err (!%p1131_p7)
}
 0x1f9   :  { %s1138_s14 = smov 128   ;;  %s1139_s15 = smov 8  }
 0x1fa   :  { %803 = dma.vmem_to_hbm [thread:$0]  %s798_s4, 4096, %s1460_s5, [#allocation3], %s1138_s14, %s1138_s14, %s1139_s15  }
 0x1fb   :  { %1135 = dma.done.wait [#allocation3], 4096  }
 0x1fc   :  { %1136 = vsyncadd [#allocation3], 4294963200 }
 0x1fd   :  { %807 = vsyncpa [#allocation3], 1 }

</bundles_post_ra>
